<compile_context>
chip_gen: v6e
topology: v6e:2x2x1
jax: 0.10.0
libtpu: 0.0.40
codegen_flags: <defaults>
</compile_context>

<pallas_src>
import functools

import numpy as np
import jax
import jax.numpy as jnp
from jax import lax
from jax.experimental import pallas as pl
from jax.experimental.pallas import tpu as pltpu

GRID_SIZE = 31
PADDING = 30
GLOBAL = GRID_SIZE + 2 * PADDING          # 91
KSIZE = 2 * PADDING + 1                   # 61
FWHM = 13
FEAT_CH = 256                             # channel width of the localization head


# -----------------------------------------------------------------------------
# constant construction (host-side glue, numpy)
# -----------------------------------------------------------------------------
def make_gaussian_2d(size, fwhm):
    x = np.arange(0, size, 1, float)
    y = x[:, np.newaxis]
    x0 = y0 = size // 2
    return np.exp(-4 * np.log(2) * ((x - x0) ** 2 + (y - y0) ** 2) / fwhm ** 2)


def make_gaussian_1d(size, fwhm):
    x = np.arange(0, size, 1, float)
    x0 = size // 2
    return np.exp(-4 * np.log(2) * (x - x0) ** 2 / fwhm ** 2)


def bilinear_matrix(in_size, out_size):
    # nn.Upsample(mode='bilinear', align_corners=False) along one axis.
    U = np.zeros((out_size, in_size), np.float64)
    scale = in_size / out_size
    for o in range(out_size):
        src = max((o + 0.5) * scale - 0.5, 0.0)
        i0 = min(int(np.floor(src)), in_size - 1)
        i1 = min(i0 + 1, in_size - 1)
        lam = src - i0
        U[o, i0] += 1.0 - lam
        U[o, i1] += lam
    return U


def p_basis():
    # P_basis[k,i,j] = k*(i-pad)/(gs-1) + (1-k)*(j-pad)/(gs-1)   (reference only)
    P = np.zeros((2, GLOBAL, GLOBAL), np.float64)
    idx = (np.arange(GLOBAL, dtype=np.float64) - PADDING) / (GRID_SIZE - 1.0)
    P[0] = idx[None, :]
    P[1] = idx[:, None]
    return P.astype(np.float32)


def conv_fold_matrices():
    # F.conv2d(ReplicationPad2d(30)(Xs), gauss61x61, VALID)    == Ap @ Xs @ Ap.T
    # F.conv2d(P0 * pad(Xs), gauss)  (P0 varies along width j) == Ap @ Xs @ Bp.T
    # F.conv2d(P1 * pad(Xs), gauss)  (P1 varies along height i)== Bp @ Xs @ Ap.T
    # with A[o, o+k] = g1d[k] (separable gaussian), R the replication-pad matrix
    # and p[j] = (j - pad)/(gs - 1).
    g1d = make_gaussian_1d(KSIZE, FWHM)
    A = np.zeros((GRID_SIZE, GLOBAL), np.float64)
    for o in range(GRID_SIZE):
        A[o, o:o + KSIZE] = g1d
    R = np.zeros((GLOBAL, GRID_SIZE), np.float64)
    src = np.clip(np.arange(GLOBAL) - PADDING, 0, GRID_SIZE - 1)
    R[np.arange(GLOBAL), src] = 1.0
    p = (np.arange(GLOBAL, dtype=np.float64) - PADDING) / (GRID_SIZE - 1.0)
    Ap = A @ R
    Bp = (A * p[None, :]) @ R
    return Ap.astype(np.float32), Bp.astype(np.float32)


def head_width_fold(W):
    # bilinear W/2 -> 31 with the even (pooled anchor) column selection folded
    # in as structural zeros; pre-transposed so the kernel does (rows,W)@(W,31).
    uw31 = bilinear_matrix(W // 2, GRID_SIZE)          # (31, W/2)
    uwf = np.zeros((GRID_SIZE, W), np.float64)
    uwf[:, 0::2] = uw31
    return np.ascontiguousarray(uwf.T).astype(np.float32)   # (W, 31)


def pick_head_rows_per_chunk(H, W, target_lanes=512):
    # smallest even divisor of H with rpc*W % 128 == 0 and rpc*W >= target;
    # falls back to a single full-height chunk (block == full dims is legal).
    best, found = H, False
    for rpc in range(2, H + 1, 2):
        if H % rpc or (rpc * W) % 128:
            continue
        best, found = rpc, True
        if rpc * W >= target_lanes:
            break
    return best if found else H


def pick_sample_rows_block(Ho, Wo, target_lanes=256):
    best = 1
    for r in range(1, Ho + 1):
        if Ho % r:
            continue
        if r > 32:
            break
        best = r
        if r * Wo >= target_lanes:
            break
    return best


# -----------------------------------------------------------------------------
# Pallas kernels
# -----------------------------------------------------------------------------
def _head_kernel(x_ref, w1_ref, w2_ref, b2_ref, uwt_ref, uh_ref, xs_ref, t_scr,
                 *, width, rpc):
    # x_ref: (1, C, rpc*width) -- rpc (even) consecutive image rows, flattened
    # on the lane axis.  Grid = (batch, H // rpc).
    s = pl.program_id(1)
    half = rpc // 2
    n = rpc * width

    xb = x_ref[0]                                               # (C, rpc*W)
    # MaxPool2d(2) via XLU lane rotations: wrapped values land only on odd
    # rows / odd columns, which are discarded below (compaction + folded uwt).
    rm = jnp.maximum(xb, pltpu.roll(xb, n - width, 1))          # rows i, i+1
    cm = jnp.maximum(rm, pltpu.roll(rm, n - 1, 1))              # cols j, j+1
    # keep only even (pooled anchor) rows -> 2x fewer 1x1-conv positions; odd
    # columns stay but get structural-zero weights in uwt.
    cm_even = jnp.concatenate(
        [cm[:, i * width:(i + 1) * width] for i in range(0, rpc, 2)],
        axis=1)                                                 # (C, half*W)

    # TODO(synk): pretrained ResNet-18 trunk (children[:-3]) has no loadable
    # weights here; it is replaced by a deterministic 1x1-conv + ReLU stand-in.
    feats = jnp.maximum(
        jnp.dot(w1_ref[...], cm_even,
                preferred_element_type=jnp.float32), 0.0)       # (256, half*W)
    sal = jnp.dot(w2_ref[...], feats,
                  preferred_element_type=jnp.float32) + b2_ref[...]   # (1, half*W)

    # separable bilinear upsample: width contraction per chunk, height at end.
    sal2d = jnp.concatenate(
        [sal[:, k * width:(k + 1) * width] for k in range(half)],
        axis=0)                                                 # (half, W)
    t = jnp.dot(sal2d, uwt_ref[...],
                preferred_element_type=jnp.float32)             # (half, 31)
    row0 = pl.multiple_of(s * half, half)
    t_scr[pl.ds(row0, half), :] = t

    @pl.when(s == pl.num_programs(1) - 1)
    def _():
        logits = jnp.dot(uh_ref[...], t_scr[...],
                         preferred_element_type=jnp.float32)    # (31, 31)
        mx = jnp.max(jnp.max(logits, axis=1, keepdims=True), axis=0,
                     keepdims=True)
        e = jnp.exp(logits - mx)
        den = jnp.sum(jnp.sum(e, axis=1, keepdims=True), axis=0, keepdims=True)
        xs_ref[0] = e / den


def _sampler_kernel(xs_ref, x_ref, cab_ref, crt_ref, uh_ref, uwt_ref,
                    out_ref, grid_ref, g_scr, *, n_ch, h_in, w_in, rows_blk):
    gs = GRID_SIZE
    ho = grid_ref.shape[2]
    wo = grid_ref.shape[3]
    rwo = rows_blk * wo

    # ---- create_grid: folded gaussian conv + bilinear upsample -------------
    xs = xs_ref[0]                                                    # (31, 31)
    l2 = jnp.dot(cab_ref[...], xs,
                 preferred_element_type=jnp.float32)                  # (62, 31)
    f2 = jnp.dot(l2, crt_ref[...],
                 preferred_element_type=jnp.float32)                  # (62, 62)
    p_f = f2[:gs, :gs]                                                # Ap Xs Ap^T
    x_f = f2[:gs, gs:]                                                # Ap Xs Bp^T
    y_f = f2[gs:, :gs]                                                # Bp Xs Ap^T
    # no epsilon: matches the PyTorch original (xs is a softmax, p_f > 0)
    inv = pl.reciprocal(p_f, approx=True)
    xg = jnp.clip(x_f * inv * 2.0 - 1.0, -1.0, 1.0)
    yg = jnp.clip(y_f * inv * 2.0 - 1.0, -1.0, 1.0)

    # nn.Upsample(size=(Ho, Wo), bilinear) for both grid channels at once.
    g2 = jnp.concatenate([xg, yg], axis=0)                            # (62, 31)
    g2w = jnp.dot(g2, uwt_ref[...],
                  preferred_element_type=jnp.float32)                 # (62, Wo)
    gstk = jnp.concatenate([g2w[:gs], g2w[gs:]], axis=1)              # (31, 2Wo)
    gfull = jnp.dot(uh_ref[...], gstk,
                    preferred_element_type=jnp.float32)               # (Ho, 2Wo)
    gx_full = gfull[:, :wo]
    gy_full = gfull[:, wo:]
    grid_ref[0, 0] = gx_full
    grid_ref[0, 1] = gy_full
    g_scr[0] = gx_full                                                # loop reads
    g_scr[1] = gy_full                                                # the scratch

    # ---- F.grid_sample(bilinear, zeros, align_corners=False) ---------------
    x2 = x_ref[0]                                                     # (C*H, W)
    qx = lax.broadcasted_iota(jnp.int32, (w_in, wo), 0)               # hoisted
    qy = lax.broadcasted_iota(jnp.int32, (h_in, wo), 0)

    @pl.loop(0, ho // rows_blk)
    def _(r):
        oy0 = pl.multiple_of(r * rows_blk, rows_blk)
        off = pl.multiple_of(r * rwo, rwo)
        gx_blk = g_scr[0, pl.ds(oy0, rows_blk), :]                    # (R, Wo)
        gy_blk = g_scr[1, pl.ds(oy0, rows_blk), :]
        sx_parts = []
        sy_parts = []
        for k in range(rows_blk):                                     # static
            gx = gx_blk[k:k + 1, :]                                   # (1, Wo)
            gy = gy_blk[k:k + 1, :]
            ix = (gx + 1.0) * (0.5 * w_in) - 0.5
            iy = (gy + 1.0) * (0.5 * h_in) - 0.5
            ix0f = jnp.floor(ix)
            iy0f = jnp.floor(iy)
            fx = ix - ix0f
            fy = iy - iy0f
            ix0 = ix0f.astype(jnp.int32)
            iy0 = iy0f.astype(jnp.int32)
            wx0 = jnp.where((ix0 >= 0) & (ix0 < w_in), 1.0 - fx, 0.0)  # zeros pad
            wx1 = jnp.where((ix0 + 1 >= 0) & (ix0 + 1 < w_in), fx, 0.0)
            wy0 = jnp.where((iy0 >= 0) & (iy0 < h_in), 1.0 - fy, 0.0)
            wy1 = jnp.where((iy0 + 1 >= 0) & (iy0 + 1 < h_in), fy, 0.0)
            sx_parts.append(jnp.where(qx == ix0, wx0, 0.0) +
                            jnp.where(qx == ix0 + 1, wx1, 0.0))        # (W, Wo)
            sy_parts.append(jnp.where(qy == iy0, wy0, 0.0) +
                            jnp.where(qy == iy0 + 1, wy1, 0.0))        # (H, Wo)
        sx = jnp.concatenate(sx_parts, axis=1)                         # (W, R*Wo)
        sy = jnp.concatenate(sy_parts, axis=1)                         # (H, R*Wo)
        # one channel-batched MXU matmul per row block.
        # TODO(synk): optionally keep x2 in bf16 here for v6e/v7x MXU rate.
        hc = jnp.dot(x2, sx, preferred_element_type=jnp.float32)       # (C*H, R*Wo)
        hs = hc * jnp.concatenate([sy] * n_ch, axis=0)                 # (C*H, R*Wo)
        outblk = jnp.concatenate(
            [jnp.sum(hs[c * h_in:(c + 1) * h_in], axis=0, keepdims=True)
             for c in range(n_ch)], axis=0)                            # (C, R*Wo)
        out_ref[0, :, pl.ds(off, rwo)] = outblk                        # lane-dense


# -----------------------------------------------------------------------------
# pallas_call wrappers
# -----------------------------------------------------------------------------
def saliency_head(x, w1, w2, b2, uwt_head, uh_head, *, rows_per_chunk):
    B, C, H, W = x.shape
    assert H % 2 == 0 and W % 2 == 0, "MaxPool2d(2) fold assumes even H, W"
    rpc = rows_per_chunk
    assert rpc % 2 == 0 and H % rpc == 0
    n_chunks = H // rpc
    chunk = rpc * W
    xf = x.reshape(B, C, H * W).astype(jnp.float32)
    return pl.pallas_call(
        functools.partial(_head_kernel, width=W, rpc=rpc),
        out_shape=jax.ShapeDtypeStruct((B, GRID_SIZE, GRID_SIZE), jnp.float32),
        grid=(B, n_chunks),
        in_specs=[
            pl.BlockSpec((1, C, chunk), lambda b, s: (b, 0, s)),
            pl.BlockSpec(w1.shape, lambda b, s: (0, 0)),
            pl.BlockSpec(w2.shape, lambda b, s: (0, 0)),
            pl.BlockSpec(b2.shape, lambda b, s: (0, 0)),
            pl.BlockSpec(uwt_head.shape, lambda b, s: (0, 0)),
            pl.BlockSpec(uh_head.shape, lambda b, s: (0, 0)),
        ],
        out_specs=pl.BlockSpec((1, GRID_SIZE, GRID_SIZE), lambda b, s: (b, 0, 0)),
        scratch_shapes=[pltpu.VMEM((H // 2, GRID_SIZE), jnp.float32)],
        compiler_params=pltpu.CompilerParams(
            dimension_semantics=("parallel", "arbitrary")),
    )(xf, w1, w2, b2, uwt_head, uh_head)


def grid_and_sample(x, xs31, cab, crt, uh_out, uwt_out, *, rows_blk):
    B, C, H, W = x.shape
    Ho = uh_out.shape[0]
    Wo = uwt_out.shape[1]
    assert Ho % rows_blk == 0
    x2 = x.reshape(B, C * H, W).astype(jnp.float32)
    out_flat, grid2 = pl.pallas_call(
        functools.partial(_sampler_kernel, n_ch=C, h_in=H, w_in=W,
                          rows_blk=rows_blk),
        out_shape=[jax.ShapeDtypeStruct((B, C, Ho * Wo), jnp.float32),
                   jax.ShapeDtypeStruct((B, 2, Ho, Wo), jnp.float32)],
        grid=(B,),
        in_specs=[
            pl.BlockSpec((1, GRID_SIZE, GRID_SIZE), lambda b: (b, 0, 0)),
            pl.BlockSpec((1, C * H, W), lambda b: (b, 0, 0)),
            pl.BlockSpec(cab.shape, lambda b: (0, 0)),
            pl.BlockSpec(crt.shape, lambda b: (0, 0)),
            pl.BlockSpec(uh_out.shape, lambda b: (0, 0)),
            pl.BlockSpec(uwt_out.shape, lambda b: (0, 0)),
        ],
        out_specs=[pl.BlockSpec((1, C, Ho * Wo), lambda b: (b, 0, 0)),
                   pl.BlockSpec((1, 2, Ho, Wo), lambda b: (b, 0, 0, 0))],
        scratch_shapes=[pltpu.VMEM((2, Ho, Wo), jnp.float32)],
        compiler_params=pltpu.CompilerParams(
            dimension_semantics=("parallel",)),       # batch axis -> megacore
    )(xs31, x2, cab, crt, uh_out, uwt_out)
    return out_flat.reshape(B, C, Ho, Wo), grid2


def saliency_sampler_forward(x, params, input_size_net):
    xs = saliency_head(x, params["w1"], params["w2"], params["b2"],
                       params["uwT_head"], params["uh_head"],
                       rows_per_chunk=params["head_rows_per_chunk"])
    out, grid2 = grid_and_sample(x, xs, params["cab"], params["crt"],
                                 params["uh_out"], params["uwT_out"],
                                 rows_blk=params["sample_rows_blk"])
    assert grid2.shape[2:] == tuple(input_size_net)
    grid = jnp.transpose(grid2, (0, 2, 3, 1))         # torch layout (B, H, W, 2)
    return out, xs, grid


# -----------------------------------------------------------------------------
# plain-JAX reference (for correctness checks only)
# -----------------------------------------------------------------------------
def ref_head(x, w1, w2, b2, uh31, uw31):
    B, C, H, W = x.shape
    pooled = x.reshape(B, C, H // 2, 2, W // 2, 2).max(axis=(3, 5))
    feats = jnp.maximum(
        jnp.einsum("oc,bchw->bohw", w1, pooled, precision="highest"), 0.0)
    sal = jnp.einsum("oc,bchw->bohw", w2, feats, precision="highest") + b2[0, 0]
    sal31 = jnp.einsum("pi,bcij,qj->bcpq", uh31, sal, uw31, precision="highest")
    logits = sal31.reshape(B, GRID_SIZE * GRID_SIZE)
    return jax.nn.softmax(logits, axis=1).reshape(B, GRID_SIZE, GRID_SIZE)


def ref_create_grid(xs, g2d, pb, uh, uw):
    B = xs.shape[0]
    xs_hm = jnp.pad(xs, ((0, 0), (PADDING, PADDING), (PADDING, PADDING)),
                    mode="edge")
    w = g2d[None, None]

    def conv(v):
        return jax.lax.conv_general_dilated(
            v, w, (1, 1), "VALID",
            dimension_numbers=("NCHW", "OIHW", "NCHW"),
            precision=jax.lax.Precision.HIGHEST)

    p_filter = conv(xs_hm[:, None])[:, 0]
    x_mul = pb[None] * xs_hm[:, None]
    all_f = conv(x_mul.reshape(B * 2, 1, GLOBAL, GLOBAL)).reshape(
        B, 2, GRID_SIZE, GRID_SIZE)
    xg = jnp.clip(all_f[:, 0] / p_filter * 2.0 - 1.0, -1.0, 1.0)
    yg = jnp.clip(all_f[:, 1] / p_filter * 2.0 - 1.0, -1.0, 1.0)
    g = jnp.stack([xg, yg], axis=1)
    gu = jnp.einsum("pi,bcij,qj->bcpq", uh, g, uw, precision="highest")
    return jnp.transpose(gu, (0, 2, 3, 1))            # (B, Ho, Wo, 2)


def ref_grid_sample(x, grid):
    B, C, H, W = x.shape
    Ho, Wo = grid.shape[1], grid.shape[2]
    gx = grid[..., 0]
    gy = grid[..., 1]
    ix = ((gx + 1.0) * W - 1.0) / 2.0
    iy = ((gy + 1.0) * H - 1.0) / 2.0
    ix0 = jnp.floor(ix)
    iy0 = jnp.floor(iy)
    fx = ix - ix0
    fy = iy - iy0
    xf = x.reshape(B, C, H * W)
    out = jnp.zeros((B, C, Ho * Wo), jnp.float32)
    for dy, dx in ((0, 0), (0, 1), (1, 0), (1, 1)):
        iyc = iy0 + dy
        ixc = ix0 + dx
        wy = fy if dy else (1.0 - fy)
        wx = fx if dx else (1.0 - fx)
        valid = (iyc >= 0) & (iyc <= H - 1) & (ixc >= 0) & (ixc <= W - 1)
        wgt = jnp.where(valid, wy * wx, 0.0)
        idx = (jnp.clip(iyc, 0, H - 1) * W
               + jnp.clip(ixc, 0, W - 1)).astype(jnp.int32)
        gath = jax.vmap(lambda xb, ib: xb[:, ib])(xf, idx.reshape(B, Ho * Wo))
        out = out + wgt.reshape(B, 1, Ho * Wo) * gath
    return out.reshape(B, C, Ho, Wo)


# -----------------------------------------------------------------------------
if __name__ == "__main__":
    B, C, H, W = 2, 3, 32, 32
    input_size_net = (H, W)                           # task_input_size

    key = jax.random.PRNGKey(0)
    kx, k1, k2, k3 = jax.random.split(key, 4)
    x = jax.random.normal(kx, (B, C, H, W), jnp.float32)

    # deterministic synthetic parameters (no checkpoint load)
    w1 = jax.random.normal(k1, (FEAT_CH, C), jnp.float32) * 0.2
    w2 = jax.random.normal(k2, (1, FEAT_CH), jnp.float32) / np.sqrt(FEAT_CH)
    b2 = jax.random.normal(k3, (1, 1), jnp.float32) * 0.1

    Ap, Bp = conv_fold_matrices()
    uh31_np = bilinear_matrix(H // 2, GRID_SIZE).astype(np.float32)   # (31, H/2)
    uw31_np = bilinear_matrix(W // 2, GRID_SIZE).astype(np.float32)   # (31, W/2)
    uh_out_np = bilinear_matrix(GRID_SIZE, input_size_net[0]).astype(np.float32)
    uw_out_np = bilinear_matrix(GRID_SIZE, input_size_net[1]).astype(np.float32)

    params = dict(
        w1=w1, w2=w2, b2=b2,
        # head: separable upsample constants (pre-transposed / selection folded)
        uwT_head=jnp.asarray(head_width_fold(W)),                     # (W, 31)
        uh_head=jnp.asarray(uh31_np),                                 # (31, H/2)
        head_rows_per_chunk=pick_head_rows_per_chunk(H, W),
        # sampler: folded gaussian conv + output upsample (pre-transposed)
        cab=jnp.asarray(np.concatenate([Ap, Bp], axis=0)),            # (62, 31)
        crt=jnp.asarray(np.concatenate([Ap.T, Bp.T], axis=1)),        # (31, 62)
        uh_out=jnp.asarray(uh_out_np),                                # (Ho, 31)
        uwT_out=jnp.asarray(np.ascontiguousarray(uw_out_np.T)),       # (31, Wo)
        sample_rows_blk=pick_sample_rows_block(*input_size_net),
    )

    out, xs, grid = saliency_sampler_forward(x, params, input_size_net)
    out = jax.block_until_ready(out)

    # --- correctness checks against the plain-JAX reference ---
    g2d = jnp.asarray(make_gaussian_2d(KSIZE, FWHM).astype(np.float32))
    pb = jnp.asarray(p_basis())

    xs_ref = ref_head(x, w1, w2, b2, jnp.asarray(uh31_np), jnp.asarray(uw31_np))
    np.testing.assert_allclose(np.asarray(xs), np.asarray(xs_ref),
                               atol=1e-4, rtol=0)
    np.testing.assert_allclose(np.asarray(xs).reshape(B, -1).sum(-1), 1.0,
                               atol=1e-4)

    grid_ref = ref_create_grid(xs_ref, g2d, pb, jnp.asarray(uh_out_np),
                               jnp.asarray(uw_out_np))
    np.testing.assert_allclose(np.asarray(grid), np.asarray(grid_ref),
                               atol=3e-2, rtol=0)

    # grid_sample semantics: reference sampler driven by the kernel's grid
    out_ref = ref_grid_sample(x, grid)
    np.testing.assert_allclose(np.asarray(out), np.asarray(out_ref),
                               atol=2e-2, rtol=0)

    assert out.shape == (B, C) + input_size_net
    assert bool(jnp.all(jnp.isfinite(out)))
    print("KERNEL_OK")
</pallas_src>

<mosaic_0001>
module attributes {stable_mosaic.version = 11 : i64} {
  func.func @_head_kernel(%arg0: i32, %arg1: i32, %arg2: memref<1x3x512xf32, #tpu.memory_space<vmem>>, %arg3: memref<256x3xf32, #tpu.memory_space<vmem>>, %arg4: memref<1x256xf32, #tpu.memory_space<vmem>>, %arg5: memref<1x1xf32, #tpu.memory_space<vmem>>, %arg6: memref<32x31xf32, #tpu.memory_space<vmem>>, %arg7: memref<31x16xf32, #tpu.memory_space<vmem>>, %arg8: memref<1x31x31xf32, #tpu.memory_space<vmem>>, %arg9: memref<16x31xf32, #tpu.memory_space<vmem>>) attributes {dimension_semantics = [#tpu.dimension_semantics<parallel>, #tpu.dimension_semantics<arbitrary>], iteration_bounds = array<i64: 2, 2>, scalar_prefetch = 0 : i64, scratch_operands = 1 : i64, tpu.core_type = #tpu.core_type<tc>, window_params = [{transform_indices = @transform_0, window_bounds = array<i64: 1, 3, 512>}, {pipeline_mode = #tpu.pipeline_mode<synchronous>, transform_indices = @transform_1, window_bounds = array<i64: 256, 3>}, {pipeline_mode = #tpu.pipeline_mode<synchronous>, transform_indices = @transform_2, window_bounds = array<i64: 1, 256>}, {pipeline_mode = #tpu.pipeline_mode<synchronous>, transform_indices = @transform_3, window_bounds = array<i64: 1, 1>}, {pipeline_mode = #tpu.pipeline_mode<synchronous>, transform_indices = @transform_4, window_bounds = array<i64: 32, 31>}, {pipeline_mode = #tpu.pipeline_mode<synchronous>, transform_indices = @transform_5, window_bounds = array<i64: 31, 16>}, {transform_indices = @transform_6, window_bounds = array<i64: 1, 31, 31>}]} {
    %c0 = arith.constant 0 : index
    %c0_0 = arith.constant 0 : index
    %c0_1 = arith.constant 0 : index
    %0 = vector.load %arg2[%c0, %c0_0, %c0_1] : memref<1x3x512xf32, #tpu.memory_space<vmem>>, vector<1x3x512xf32>
    %1 = vector.shape_cast %0 : vector<1x3x512xf32> to vector<3x512xf32>
    %c480_i32 = arith.constant 480 : i32
    %2 = tpu.dynamic_rotate %1 by %c480_i32 dim 1 : vector<3x512xf32>, i32 -> vector<3x512xf32>
    %3 = arith.maximumf %1, %2 : vector<3x512xf32>
    %c511_i32 = arith.constant 511 : i32
    %4 = tpu.dynamic_rotate %3 by %c511_i32 dim 1 : vector<3x512xf32>, i32 -> vector<3x512xf32>
    %5 = arith.maximumf %3, %4 : vector<3x512xf32>
    %6 = vector.extract_strided_slice %5 {offsets = [0, 0], sizes = [3, 32], strides = [1, 1]} : vector<3x512xf32> to vector<3x32xf32>
    %7 = vector.extract_strided_slice %5 {offsets = [0, 64], sizes = [3, 32], strides = [1, 1]} : vector<3x512xf32> to vector<3x32xf32>
    %8 = vector.extract_strided_slice %5 {offsets = [0, 128], sizes = [3, 32], strides = [1, 1]} : vector<3x512xf32> to vector<3x32xf32>
    %9 = vector.extract_strided_slice %5 {offsets = [0, 192], sizes = [3, 32], strides = [1, 1]} : vector<3x512xf32> to vector<3x32xf32>
    %10 = vector.extract_strided_slice %5 {offsets = [0, 256], sizes = [3, 32], strides = [1, 1]} : vector<3x512xf32> to vector<3x32xf32>
    %11 = vector.extract_strided_slice %5 {offsets = [0, 320], sizes = [3, 32], strides = [1, 1]} : vector<3x512xf32> to vector<3x32xf32>
    %12 = vector.extract_strided_slice %5 {offsets = [0, 384], sizes = [3, 32], strides = [1, 1]} : vector<3x512xf32> to vector<3x32xf32>
    %13 = vector.extract_strided_slice %5 {offsets = [0, 448], sizes = [3, 32], strides = [1, 1]} : vector<3x512xf32> to vector<3x32xf32>
    %14 = tpu.concatenate %6, %7, %8, %9, %10, %11, %12, %13 in 1 : vector<3x32xf32>, vector<3x32xf32>, vector<3x32xf32>, vector<3x32xf32>, vector<3x32xf32>, vector<3x32xf32>, vector<3x32xf32>, vector<3x32xf32> -> vector<3x256xf32>
    %c0_2 = arith.constant 0 : index
    %c0_3 = arith.constant 0 : index
    %15 = vector.load %arg3[%c0_2, %c0_3] : memref<256x3xf32, #tpu.memory_space<vmem>>, vector<256x3xf32>
    %cst = arith.constant dense<0.000000e+00> : vector<256x256xf32>
    %16 = tpu.matmul %15, %14, %cst {dimension_numbers = #tpu.dot_dimension_numbers<[1], [0], [0], [1], [0, 0, 1, 1], [], []>} : vector<256x3xf32>, vector<3x256xf32>, vector<256x256xf32> -> vector<256x256xf32>
    %cst_4 = arith.constant 0.000000e+00 : f32
    %17 = vector.broadcast %cst_4 : f32 to vector<256x256xf32>
    %18 = arith.maximumf %16, %17 : vector<256x256xf32>
    %c0_5 = arith.constant 0 : index
    %c0_6 = arith.constant 0 : index
    %19 = vector.load %arg4[%c0_5, %c0_6] : memref<1x256xf32, #tpu.memory_space<vmem>>, vector<1x256xf32>
    %cst_7 = arith.constant dense<0.000000e+00> : vector<1x256xf32>
    %20 = tpu.matmul %19, %18, %cst_7 {dimension_numbers = #tpu.dot_dimension_numbers<[1], [0], [0], [1], [0, 0, 1, 1], [], []>} : vector<1x256xf32>, vector<256x256xf32>, vector<1x256xf32> -> vector<1x256xf32>
    %c0_8 = arith.constant 0 : index
    %c0_9 = arith.constant 0 : index
    %21 = vector.load %arg5[%c0_8, %c0_9] : memref<1x1xf32, #tpu.memory_space<vmem>>, vector<1x1xf32>
    %22 = vector.broadcast %21 : vector<1x1xf32> to vector<1x256xf32>
    %23 = arith.addf %20, %22 : vector<1x256xf32>
    %24 = vector.extract_strided_slice %23 {offsets = [0, 0], sizes = [1, 32], strides = [1, 1]} : vector<1x256xf32> to vector<1x32xf32>
    %25 = vector.extract_strided_slice %23 {offsets = [0, 32], sizes = [1, 32], strides = [1, 1]} : vector<1x256xf32> to vector<1x32xf32>
    %26 = vector.extract_strided_slice %23 {offsets = [0, 64], sizes = [1, 32], strides = [1, 1]} : vector<1x256xf32> to vector<1x32xf32>
    %27 = vector.extract_strided_slice %23 {offsets = [0, 96], sizes = [1, 32], strides = [1, 1]} : vector<1x256xf32> to vector<1x32xf32>
    %28 = vector.extract_strided_slice %23 {offsets = [0, 128], sizes = [1, 32], strides = [1, 1]} : vector<1x256xf32> to vector<1x32xf32>
    %29 = vector.extract_strided_slice %23 {offsets = [0, 160], sizes = [1, 32], strides = [1, 1]} : vector<1x256xf32> to vector<1x32xf32>
    %30 = vector.extract_strided_slice %23 {offsets = [0, 192], sizes = [1, 32], strides = [1, 1]} : vector<1x256xf32> to vector<1x32xf32>
    %31 = vector.extract_strided_slice %23 {offsets = [0, 224], sizes = [1, 32], strides = [1, 1]} : vector<1x256xf32> to vector<1x32xf32>
    %32 = tpu.concatenate %24, %25, %26, %27, %28, %29, %30, %31 in 0 : vector<1x32xf32>, vector<1x32xf32>, vector<1x32xf32>, vector<1x32xf32>, vector<1x32xf32>, vector<1x32xf32>, vector<1x32xf32>, vector<1x32xf32> -> vector<8x32xf32>
    %c0_10 = arith.constant 0 : index
    %c0_11 = arith.constant 0 : index
    %33 = vector.load %arg6[%c0_10, %c0_11] : memref<32x31xf32, #tpu.memory_space<vmem>>, vector<32x31xf32>
    %cst_12 = arith.constant dense<0.000000e+00> : vector<8x31xf32>
    %34 = tpu.matmul %32, %33, %cst_12 {dimension_numbers = #tpu.dot_dimension_numbers<[1], [0], [0], [1], [0, 0, 1, 1], [], []>} : vector<8x32xf32>, vector<32x31xf32>, vector<8x31xf32> -> vector<8x31xf32>
    %c8_i32 = arith.constant 8 : i32
    %35 = arith.muli %arg1, %c8_i32 : i32
    %36 = tpu.assume_multiple %35, 8 : i32
    %37 = arith.index_cast %36 : i32 to index
    %c0_13 = arith.constant 0 : index
    %38 = vector.load %arg9[%37, %c0_13] : memref<16x31xf32, #tpu.memory_space<vmem>>, vector<8x31xf32>
    tpu.vector_store %arg9[%37, %c0_13], %34 {strides = array<i32>} : memref<16x31xf32, #tpu.memory_space<vmem>>, vector<8x31xf32>,
    %c1_i32 = arith.constant 1 : i32
    %39 = arith.cmpi eq, %arg1, %c1_i32 : i32
    %40 = arith.extui %39 : i1 to i32
    %c0_i32 = arith.constant 0 : i32
    %41 = arith.cmpi ne, %40, %c0_i32 : i32
    scf.if %41 {
      %c0_14 = arith.constant 0 : index
      %c0_15 = arith.constant 0 : index
      %42 = vector.load %arg7[%c0_14, %c0_15] : memref<31x16xf32, #tpu.memory_space<vmem>>, vector<31x16xf32>
      %c0_16 = arith.constant 0 : index
      %c0_17 = arith.constant 0 : index
      %43 = vector.load %arg9[%c0_16, %c0_17] : memref<16x31xf32, #tpu.memory_space<vmem>>, vector<16x31xf32>
      %cst_18 = arith.constant dense<0.000000e+00> : vector<31x31xf32>
      %44 = tpu.matmul %42, %43, %cst_18 {dimension_numbers = #tpu.dot_dimension_numbers<[1], [0], [0], [1], [0, 0, 1, 1], [], []>} : vector<31x16xf32>, vector<16x31xf32>, vector<31x31xf32> -> vector<31x31xf32>
      %cst_19 = arith.constant dense<0xFF800000> : vector<31xf32>
      %45 = vector.multi_reduction <maximumf>, %44, %cst_19 [1] : vector<31x31xf32> to vector<31xf32>
      %46 = vector.shape_cast %45 : vector<31xf32> to vector<31x1xf32>
      %cst_20 = arith.constant dense<0xFF800000> : vector<1xf32>
      %47 = vector.multi_reduction <maximumf>, %46, %cst_20 [0] : vector<31x1xf32> to vector<1xf32>
      %48 = vector.shape_cast %47 : vector<1xf32> to vector<1x1xf32>
      %49 = vector.broadcast %48 : vector<1x1xf32> to vector<31x31xf32>
      %50 = arith.subf %44, %49 : vector<31x31xf32>
      %51 = math.exp %50 : vector<31x31xf32>
      %cst_21 = arith.constant dense<0.000000e+00> : vector<31xf32>
      %52 = vector.multi_reduction <add>, %51, %cst_21 [1] : vector<31x31xf32> to vector<31xf32>
      %53 = vector.shape_cast %52 : vector<31xf32> to vector<31x1xf32>
      %cst_22 = arith.constant dense<0.000000e+00> : vector<1xf32>
      %54 = vector.multi_reduction <add>, %53, %cst_22 [0] : vector<31x1xf32> to vector<1xf32>
      %55 = vector.shape_cast %54 : vector<1xf32> to vector<1x1xf32>
      %56 = vector.broadcast %55 : vector<1x1xf32> to vector<31x31xf32>
      %57 = arith.divf %51, %56 : vector<31x31xf32>
      %c0_23 = arith.constant 0 : index
      %c0_24 = arith.constant 0 : index
      %c0_25 = arith.constant 0 : index
      %58 = vector.load %arg8[%c0_23, %c0_24, %c0_25] : memref<1x31x31xf32, #tpu.memory_space<vmem>>, vector<1x31x31xf32>
      %59 = vector.shape_cast %58 : vector<1x31x31xf32> to vector<31x31xf32>
      %60 = vector.shape_cast %57 : vector<31x31xf32> to vector<1x31x31xf32>
      tpu.vector_store %arg8[%c0_23, %c0_24, %c0_25], %60 {strides = array<i32>} : memref<1x31x31xf32, #tpu.memory_space<vmem>>, vector<1x31x31xf32>,
    } else {
    }
    return
  }
  func.func @transform_0(%arg0: i32, %arg1: i32) -> (i32, i32, i32) {
    %c0_i32 = arith.constant 0 : i32
    %c0_i32_0 = arith.constant 0 : i32
    return %arg0, %c0_i32, %arg1 : i32, i32, i32
  }
  func.func @transform_1(%arg0: i32, %arg1: i32) -> (i32, i32) {
    %c0_i32 = arith.constant 0 : i32
    %c0_i32_0 = arith.constant 0 : i32
    %c0_i32_1 = arith.constant 0 : i32
    return %c0_i32, %c0_i32_0 : i32, i32
  }
  func.func @transform_2(%arg0: i32, %arg1: i32) -> (i32, i32) {
    %c0_i32 = arith.constant 0 : i32
    %c0_i32_0 = arith.constant 0 : i32
    %c0_i32_1 = arith.constant 0 : i32
    return %c0_i32, %c0_i32_0 : i32, i32
  }
  func.func @transform_3(%arg0: i32, %arg1: i32) -> (i32, i32) {
    %c0_i32 = arith.constant 0 : i32
    %c0_i32_0 = arith.constant 0 : i32
    %c0_i32_1 = arith.constant 0 : i32
    return %c0_i32, %c0_i32_0 : i32, i32
  }
  func.func @transform_4(%arg0: i32, %arg1: i32) -> (i32, i32) {
    %c0_i32 = arith.constant 0 : i32
    %c0_i32_0 = arith.constant 0 : i32
    %c0_i32_1 = arith.constant 0 : i32
    return %c0_i32, %c0_i32_0 : i32, i32
  }
  func.func @transform_5(%arg0: i32, %arg1: i32) -> (i32, i32) {
    %c0_i32 = arith.constant 0 : i32
    %c0_i32_0 = arith.constant 0 : i32
    %c0_i32_1 = arith.constant 0 : i32
    return %c0_i32, %c0_i32_0 : i32, i32
  }
  func.func @transform_6(%arg0: i32, %arg1: i32) -> (i32, i32, i32) {
    %c0_i32 = arith.constant 0 : i32
    %c0_i32_0 = arith.constant 0 : i32
    %c0_i32_1 = arith.constant 0 : i32
    return %arg0, %c0_i32, %c0_i32_0 : i32, i32, i32
  }
}

</mosaic_0001>

<bundles_post_ra>
// kernel: tpu_custom_call.1
= control target key start
LH: loop header
LB: loop body
LE: loop exit
PB: predicated region body
PF: predicated region fallthrough
CT: control target
= control target key end

     0   :  { %s1530_s23 = smov 0   ;;  %s1532_s24 = smov 0   ;;  %s1925_s0 = inlined_call_operand.vmem [shape: f32[2,3,1024], index: 0, kind: input, shape index: {}]   ;;  %s1926_s1 = inlined_call_operand.vmem [shape: f32[256,3], index: 1, kind: input, shape index: {}]   ;;  %s1927_s2 = inlined_call_operand.vmem [shape: f32[1,256], index: 2, kind: input, shape index: {}]   ;;  %s1928_s3 = inlined_call_operand.<no memory space> [shape: f32[1,1], index: 3, kind: input, shape index: {}]   ;;  %s1929_s4 = inlined_call_operand.vmem [shape: f32[32,31], index: 4, kind: input, shape index: {}]   ;;  %s1930_s5 = inlined_call_operand.vmem [shape: f32[31,16], index: 5, kind: input, shape index: {}]   ;;  %s1931_s6 = inlined_call_operand.vmem [shape: f32[2,31,31], index: 6, kind: output, shape index: {}]  }
   0x1   :  { %v11_v0 = vstv %s1928_s3  ;;  %s1534_s25 = smov 0   ;;  %s1536_s26 = smov 0  }
   0x2   :  { %12 = vst [vmem:[#allocation3] sm:$0x1] %v11_v0  ;;  %s1538_s27 = smov 0  }
   0x3 LB: > { %s27_s3 = sadd.s32 1, %s1475_s25  ;;  %s30_s28 = sadd.s32 1, %s1479_s26  ;;  %s1483_s27 = sphi %s1538_s27, %s18_s27   ;;  %s1479_s26 = sphi %s1536_s26, %s1935_s26   ;;  %s1475_s25 = sphi %s1534_s25, %s1934_s25   ;;  %s1471_s24 = sphi %s1532_s24, %s1933_s24   ;;  %s1467_s23 = sphi %s1530_s23, %s1932_s23  }
   0x4   : > { %p28_p0 = scmp.ge.s32.totalorder %s27_s3, 2  ;;  %p1299_p1 = scmp.ge.s32.totalorder %s1483_s27, 1 }
   0x5   : > { %p233_p2 = scmp.lt.s32.totalorder %s1483_s27, 5 }
   0x6   : > { %s1937_s3 = smov (%p28_p0, %s27_s3), 0  ;;  %s1939_s28 = smov (!%p28_p0, %s30_s28), %s1479_s26 }
   0x7   : > { %p234_p3 = pnand %p1299_p1, %p233_p2  ;;  %p32_p4 = scmp.ge.s32.totalorder %s1939_s28, 2 }
   0x8   : > { %s1300_s29 = sshll.u32 (!%p234_p3), %s1467_s23, 2  ;;  %p268_p5 = scmp.lt.s32.totalorder (!%p234_p3), %s1471_s24, 1 }
   0x9   : > { %s1941_s28 = smov (%p32_p4, %s1939_s28), 0  ;;  %237 = sbr.rel (%p234_p3) target bundleno = 1828 (0x724), region = 44 }
   0xa   : > { %p270_p6 = scmp.lt.s32.totalorder (!%p234_p3), %s1300_s29, 7  ;;  %s1485_s16 = smov (!%p234_p3), 96  }
   0xb   : > { %s1486_s17 = smov (!%p234_p3), 127   ;;  %s1488_s18 = smov (!%p234_p3), 64  }
   0xc   : > { %s1489_s19 = smov (!%p234_p3), 32   ;;  %p1341_p7 = scmp.ne.s32.totalorder (!%p234_p3), %s1467_s23, 1 }
   0xe   : > { %s1943_s24 = smov (!%p268_p5, %s1471_s24), 1  ;;  %s1945_s29 = smov (!%p270_p6, %s1300_s29), 7  ;;  %v298_v5 = vlaneseq  ;;  %v1487_v32 = vmov 0.0   ;;  %vm366_vm2 = vcmask 261120   ;;  %vm368_vm3 = vcmask 523264   ;;  %v375_v47 = vld [vmem:[%s1926_s1] sm:$0xff] }
   0xf   : > { %s1301_s30 = sshll.u32 %s1943_s24, 3  ;;  %s1348_s7 = sshll.u32 %s1943_s24, 5  ;;  %575 = vmatprep.mubr.f32.mxu0 %v1487_v32  ;;  %vm370_vm4 = vcmask 785408   ;;  %vm504_vm5 = vcmask 1042432   ;;  %vm407_vm6 = vcmask 23552   ;;  %v376_v49 = vld [vmem:[%s1926_s1 + $0x8] sm:$0xff] }
  0x10   : > { %s273_s8 = sadd.s32 %s1301_s30, %s1945_s29  ;;  %s1566_s11 = scalar_lea.vmem %s1931_s6, %s1348_s7  ;;  %v299_v6 = vand.u32 127, %v298_v5  ;;  %v377_v50 = vld [vmem:[%s1926_s1 + $0x10] sm:$0xff]  ;;  %v378_v51 = vld [vmem:[%s1926_s1 + $0x18] sm:$0xff]  ;;  %v379_v52 = vld [vmem:[%s1926_s1 + $0x20] sm:$0xff]  ;;  %vm1491_vm7 = vmmov 0   ;;  %vm953_vm8 = vcmask 1040384  }
  0x11   : > { %s1302_s12 = sshll.u32 %s273_s8, 2  ;;  %v380_v53 = vld [vmem:[%s1926_s1 + $0x28] sm:$0xff]  ;;  %v381_v54 = vld [vmem:[%s1926_s1 + $0x30] sm:$0xff]  ;;  %v382_v55 = vld [vmem:[%s1926_s1 + $0x38] sm:$0xff]  ;;  %vm955_vm9 = vcmask 1041408   ;;  %vm958_vm10 = vcmask 1043456  }
  0x12   : > { %s275_s15 = scalar_lea.vmem %s1925_s0, %s1302_s12  ;;  %vm300_vm0 = vcmp.lt.s32.totalorder %v299_v6, 96  ;;  %vm329_vm1 = vcmp.lt.s32.totalorder %v299_v6, 127  ;;  %v383_v56 = vld [vmem:[%s1926_s1 + $0x40] sm:$0xff]  ;;  %v384_v57 = vld [vmem:[%s1926_s1 + $0x48] sm:$0xff]  ;;  %v385_v58 = vld [vmem:[%s1926_s1 + $0x50] sm:$0xff]  ;;  %vm960_vm11 = vcmask 1044480  }
  0x13   : > { %v282_v1 = vld [vmem:[%s275_s15] sm:$0x77]  ;;  %v283_v2 = vld [vmem:[%s275_s15 + $0x8] sm:$0x77]  ;;  %v386_v59 = vld [vmem:[%s1926_s1 + $0x58] sm:$0xff]  ;;  %vm962_vm12 = vcmask 1045504  }
  0x14   : > { %290 = vrot.lane.b32.xlu0 %v282_v1, %s1485_s16  ;;  %v287_v3 = vcombine.high %v283_v2, %v283_v2  ;;  %v286_v4 = vcombine.high %v282_v1, %v282_v1  ;;  %v387_v60 = vld [vmem:[%s1926_s1 + $0x60] sm:$0xff]  ;;  %v388_v61 = vld [vmem:[%s1926_s1 + $0x68] sm:$0xff]  ;;  %v389_v62 = vld [vmem:[%s1926_s1 + $0x70] sm:$0xff]  ;;  %vm964_vm13 = vcmask 1046528   ;;  %vm1045_vm14 = vcmask 252928  }
  0x15   : > { %v390_v63 = vld [vmem:[%s1926_s1 + $0x78] sm:$0xff]  ;;  %v391_v0 = vld [vmem:[%s1926_s1 + $0x80] sm:$0xff]  ;;  %v396_v6 = vld [vmem:[%s1926_s1 + $0xa8] sm:$0xff] }
  0x16   : > { %296 = vrot.lane.b32.xlu1 %v287_v3, %s1485_s16  ;;  %v394_v3 = vld [vmem:[%s1926_s1 + $0x98] sm:$0xff] }
  0x18   : > { %294 = vrot.lane.b32.xlu0 %v283_v2, %s1485_s16 }
  0x1a   : > { %292 = vrot.lane.b32.xlu1 %v286_v4, %s1485_s16  ;;  %v395_v4 = vld [vmem:[%s1926_s1 + $0xa0] sm:$0xff] }
  0x86   : > { %v291_v7 = vpop.permute.xlu0 %290 }
  0x88   : > { %v297_v8 = vpop.permute.xlu1 %296 }
  0x89   : > { %v304_v10 = vsel %vm300_vm0, %v297_v8, %v291_v7 }
  0x8a   : > { %v295_v9 = vpop.permute.xlu0 %294 }
  0x8b   : > { %v301_v11 = vsel %vm300_vm0, %v295_v9, %v297_v8  ;;  %v398_v8 = vld [vmem:[%s1926_s1 + $0xb8] sm:$0xff] }
  0x8c   : > { %v310_v12 = vcombine.low %v301_v11, %v304_v10  ;;  %v293_v13 = vpop.permute.xlu1 %292  ;;  %v400_v10 = vld [vmem:[%s1926_s1 + $0xc8] sm:$0xff]  ;;  %v401_v11 = vld [vmem:[%s1926_s1 + $0xd0] sm:$0xff] }
  0x8d   : > { %v302_v14 = vsel %vm300_vm0, %v293_v13, %v295_v9  ;;  %v303_v15 = vsel %vm300_vm0, %v291_v7, %v293_v13  ;;  %v397_v7 = vld [vmem:[%s1926_s1 + $0xb0] sm:$0xff]  ;;  %v399_v9 = vld [vmem:[%s1926_s1 + $0xc0] sm:$0xff] }
  0x8e   : > { %v309_v16 = vcombine.low %v303_v15, %v302_v14  ;;  %v314_v17 = vmax.f32 %v283_v2, %v310_v12  ;;  %v393_v2 = vld [vmem:[%s1926_s1 + $0x90] sm:$0xff]  ;;  %v402_v12 = vld [vmem:[%s1926_s1 + $0xd8] sm:$0xff]  ;;  %v403_v13 = vld [vmem:[%s1926_s1 + $0xe0] sm:$0xff] }
  0x8f   : > { %v404_v14 = vld [vmem:[%s1926_s1 + $0xe8] sm:$0xff]  ;;  %v405_v15 = vld [vmem:[%s1926_s1 + $0xf0] sm:$0xff] }
  0x90   : > { %325 = vrot.lane.b32.xlu1 %v314_v17, %s1486_s17  ;;  %v313_v18 = vmax.f32 %v282_v1, %v309_v16  ;;  %v318_v20 = vcombine.high %v314_v17, %v314_v17  ;;  %v392_v1 = vld [vmem:[%s1926_s1 + $0x88] sm:$0xff]  ;;  %v406_v16 = vld [vmem:[%s1926_s1 + $0xf8] sm:$0xff] }
  0x92   : > { %321 = vrot.lane.b32.xlu0 %v313_v18, %s1486_s17  ;;  %v317_v19 = vcombine.high %v313_v18, %v313_v18 }
  0x94   : > { %323 = vrot.lane.b32.xlu1 %v317_v19, %s1486_s17 }
  0x96   : > { %327 = vrot.lane.b32.xlu0 %v318_v20, %s1486_s17 }
 0x102   : > { %v326_v21 = vpop.permute.xlu1 %325 }
 0x104   : > { %v322_v22 = vpop.permute.xlu0 %321 }
 0x106   : > { %v324_v23 = vpop.permute.xlu1 %323 }
 0x107   : > { %v331_v24 = vsel %vm329_vm1, %v324_v23, %v326_v21  ;;  %v332_v25 = vsel %vm329_vm1, %v322_v22, %v324_v23 }
 0x108   : > { %v338_v26 = vcombine.low %v332_v25, %v331_v24  ;;  %v328_v27 = vpop.permute.xlu0 %327 }
 0x109   : > { %v330_v28 = vsel %vm329_vm1, %v326_v21, %v328_v27  ;;  %v333_v29 = vsel %vm329_vm1, %v328_v27, %v322_v22 }
 0x10a   : > { %v339_v30 = vcombine.low %v330_v28, %v333_v29  ;;  %v342_v31 = vmax.f32 %v313_v18, %v338_v26 }
 0x10c   : > { %345 = vrot.lane.b32.xlu1 %v342_v31, %s1485_s16  ;;  %v343_v33 = vmax.f32 %v314_v17, %v339_v30  ;;  %v348_v34 = vcombine.high %v342_v31, %v342_v31 }
 0x10e   : > { %356 = vrot.lane.b32.xlu0 %v343_v33, %s1485_s16  ;;  %v359_v35 = vcombine.high %v343_v33, %v343_v33 }
 0x110   : > { %349 = vrot.lane.b32.xlu1 %v348_v34, %s1488_s18 }
 0x112   : > { %360 = vrot.lane.b32.xlu0 %v359_v35, %s1488_s18 }
 0x114   : > { %352 = vrot.lane.b32.xlu1 %v348_v34, %s1489_s19 }
 0x116   : > { %363 = vrot.lane.b32.xlu0 %v359_v35, %s1489_s19  ;;  %v1783_v35 = vld [vmem:[%s1927_s2] sm:$0x3] }
 0x17e   : > { %v346_v36 = vpop.permute.xlu1 %345 }
 0x17f   : > { %v367_v42 = vsel %vm366_vm2, %v342_v31, %v346_v36  ;;  %v1775_v31 = vshrl.u32 %v298_v5, 7  ;;  %v1490_v5 = vmov 0  }
 0x180   : > { %v357_v37 = vpop.permute.xlu0 %356  ;;  %1432 = vset.pattern.permute.xlu0 %v1490_v5 }
 0x181   : > { %v372_v40 = vsel %vm366_vm2, %v343_v33, %v357_v37  ;;  %v850_v34 = vsub.s32 1, %v1775_v31 }
 0x182   : > { %v350_v38 = vpop.permute.xlu1 %349 }
 0x183   : > { %v369_v45 = vsel %vm368_vm3, %v367_v42, %v350_v38  ;;  %v851_v37 = vrot.slane %v1783_v35, %v850_v34 }
 0x184   : > { %v361_v39 = vpop.permute.xlu0 %360 }
 0x185   : > { %v373_v43 = vsel %vm368_vm3, %v372_v40, %v361_v39  ;;  %918 = vmatprep.mubr.f32.mxu1 %v851_v37  ;;  %v833_v39 = vld [vmem:[#allocation3] sm:$0x1] }
 0x186   : > { %v353_v41 = vpop.permute.xlu1 %352  ;;  %836 = vperm.xlu0 %1432, %v833_v39  }
 0x187   : > { %v371_v48 = vsel %vm370_vm4, %v369_v45, %v353_v41 }
 0x188   : > { %v364_v44 = vpop.permute.xlu0 %363 }
 0x189   : > { %v374_v46 = vsel %vm370_vm4, %v373_v43, %v364_v44 }
 0x18a   : > { %1305 = vmatprep.subr.msk.mxu0 %vm504_vm5, %v374_v46 }
 0x18b   : > { %1306 = vmatpush1.msk.msra.mxu0 %vm504_vm5, %v371_v48 }
 0x18c   : > { %1307 = vmatmul.mubr.msk.f32.vlgmr.msra.gmra.mxu0 %vm407_vm6, %v375_v47 }
 0x18d   : > { %581 = vmatprep.mubr.f32.mxu0 %v1487_v32 }
 0x190   : > { %1308 = vmatmul.mubr.msk.f32.gmra.mxu0 %vm407_vm6, %v376_v49 }
 0x191   : > { %587 = vmatprep.mubr.f32.mxu0 %v1487_v32 }
 0x194   : > { %1309 = vmatmul.mubr.msk.f32.gmra.mxu0 %vm407_vm6, %v377_v50 }
 0x195   : > { %593 = vmatprep.mubr.f32.mxu0 %v1487_v32 }
 0x198   : > { %1310 = vmatmul.mubr.msk.f32.gmra.mxu0 %vm407_vm6, %v378_v51 }
 0x199   : > { %599 = vmatprep.mubr.f32.mxu0 %v1487_v32 }
 0x19c   : > { %1311 = vmatmul.mubr.msk.f32.gmra.mxu0 %vm407_vm6, %v379_v52 }
 0x19d   : > { %605 = vmatprep.mubr.f32.mxu0 %v1487_v32 }
 0x1a0   : > { %1312 = vmatmul.mubr.msk.f32.gmra.mxu0 %vm407_vm6, %v380_v53 }
 0x1a1   : > { %611 = vmatprep.mubr.f32.mxu0 %v1487_v32 }
 0x1a4   : > { %1313 = vmatmul.mubr.msk.f32.gmra.mxu0 %vm407_vm6, %v381_v54 }
 0x1a5   : > { %617 = vmatprep.mubr.f32.mxu0 %v1487_v32 }
 0x1a8   : > { %1314 = vmatmul.mubr.msk.f32.gmra.mxu0 %vm407_vm6, %v382_v55 }
 0x1a9   : > { %623 = vmatprep.mubr.f32.mxu0 %v1487_v32 }
 0x1ac   : > { %1315 = vmatmul.mubr.msk.f32.gmra.mxu0 %vm407_vm6, %v383_v56 }
 0x1ad   : > { %629 = vmatprep.mubr.f32.mxu0 %v1487_v32 }
 0x1b0   : > { %1316 = vmatmul.mubr.msk.f32.gmra.mxu0 %vm407_vm6, %v384_v57 }
 0x1b1   : > { %635 = vmatprep.mubr.f32.mxu0 %v1487_v32 }
 0x1b4   : > { %1317 = vmatmul.mubr.msk.f32.gmra.mxu0 %vm407_vm6, %v385_v58 }
 0x1b5   : > { %641 = vmatprep.mubr.f32.mxu0 %v1487_v32 }
 0x1b8   : > { %1318 = vmatmul.mubr.msk.f32.gmra.mxu0 %vm407_vm6, %v386_v59 }
 0x1b9   : > { %647 = vmatprep.mubr.f32.mxu0 %v1487_v32 }
 0x1bc   : > { %1319 = vmatmul.mubr.msk.f32.gmra.mxu0 %vm407_vm6, %v387_v60 }
 0x1bd   : > { %653 = vmatprep.mubr.f32.mxu0 %v1487_v32 }
 0x1c0   : > { %1320 = vmatmul.mubr.msk.f32.gmra.mxu0 %vm407_vm6, %v388_v61 }
 0x1c1   : > { %659 = vmatprep.mubr.f32.mxu0 %v1487_v32 }
 0x1c4   : > { %1321 = vmatmul.mubr.msk.f32.gmra.mxu0 %vm407_vm6, %v389_v62 }
 0x1c5   : > { %665 = vmatprep.mubr.f32.mxu0 %v1487_v32 }
 0x1c8   : > { %1322 = vmatmul.mubr.msk.f32.gmra.mxu0 %vm407_vm6, %v390_v63 }
 0x1c9   : > { %671 = vmatprep.mubr.f32.mxu0 %v1487_v32 }
 0x1cc   : > { %1323 = vmatmul.mubr.msk.f32.gmra.mxu0 %vm407_vm6, %v391_v0 }
 0x1cd   : > { %677 = vmatprep.mubr.f32.mxu0 %v1487_v32 }
 0x1d0   : > { %1324 = vmatmul.mubr.msk.f32.gmra.mxu0 %vm407_vm6, %v392_v1 }
 0x1d1   : > { %683 = vmatprep.mubr.f32.mxu0 %v1487_v32 }
 0x1d4   : > { %1325 = vmatmul.mubr.msk.f32.gmra.mxu0 %vm407_vm6, %v393_v2 }
 0x1d5   : > { %689 = vmatprep.mubr.f32.mxu0 %v1487_v32 }
 0x1d8   : > { %1326 = vmatmul.mubr.msk.f32.gmra.mxu0 %vm407_vm6, %v394_v3 }
 0x1d9   : > { %695 = vmatprep.mubr.f32.mxu0 %v1487_v32 }
 0x1dc   : > { %1327 = vmatmul.mubr.msk.f32.gmra.mxu0 %vm407_vm6, %v395_v4 }
 0x1dd   : > { %701 = vmatprep.mubr.f32.mxu0 %v1487_v32 }
 0x1e0   : > { %1328 = vmatmul.mubr.msk.f32.gmra.mxu0 %vm407_vm6, %v396_v6 }
 0x1e1   : > { %707 = vmatprep.mubr.f32.mxu0 %v1487_v32 }
 0x1e4   : > { %1329 = vmatmul.mubr.msk.f32.gmra.mxu0 %vm407_vm6, %v397_v7 }
 0x1e5   : > { %713 = vmatprep.mubr.f32.mxu0 %v1487_v32 }
 0x1e8   : > { %1330 = vmatmul.mubr.msk.f32.gmra.mxu0 %vm407_vm6, %v398_v8 }
 0x1e9   : > { %719 = vmatprep.mubr.f32.mxu0 %v1487_v32 }
 0x1ec   : > { %1331 = vmatmul.mubr.msk.f32.gmra.mxu0 %vm407_vm6, %v399_v9 }
 0x1ed   : > { %725 = vmatprep.mubr.f32.mxu0 %v1487_v32 }
 0x1f0   : > { %1332 = vmatmul.mubr.msk.f32.gmra.mxu0 %vm407_vm6, %v400_v10 }
 0x1f1   : > { %731 = vmatprep.mubr.f32.mxu0 %v1487_v32 }
 0x1f4   : > { %1333 = vmatmul.mubr.msk.f32.gmra.mxu0 %vm407_vm6, %v401_v11 }
 0x1f5   : > { %737 = vmatprep.mubr.f32.mxu0 %v1487_v32 }
 0x1f8   : > { %1334 = vmatmul.mubr.msk.f32.gmra.mxu0 %vm407_vm6, %v402_v12 }
 0x1f9   : > { %743 = vmatprep.mubr.f32.mxu0 %v1487_v32 }
 0x1fc   : > { %1335 = vmatmul.mubr.msk.f32.gmra.mxu0 %vm407_vm6, %v403_v13 }
 0x1fd   : > { %749 = vmatprep.mubr.f32.mxu0 %v1487_v32 }
 0x200   : > { %1336 = vmatmul.mubr.msk.f32.gmra.mxu0 %vm407_vm6, %v404_v14 }
 0x201   : > { %755 = vmatprep.mubr.f32.mxu0 %v1487_v32 }
 0x204   : > { %1337 = vmatmul.mubr.msk.f32.gmra.mxu0 %vm407_vm6, %v405_v15 }
 0x205   : > { %761 = vmatprep.mubr.f32.mxu0 %v1487_v32 }
 0x208   : > { %1338 = vmatmul.mubr.msk.f32.gmra.mxu0 %vm407_vm6, %v406_v16 }
 0x24c   : > { %v1746_v17 = vpop.f32.mrf.mxu0 }
 0x24e   : > { %v1748_v18 = vpop.f32.mrf.mxu0 }
 0x250   : > { %v1750_v19 = vpop.f32.mrf.mxu0 }
 0x252   : > { %v1752_v20 = vpop.f32.mrf.mxu0 }
 0x254   : > { %v1754_v21 = vpop.f32.mrf.mxu0 }
 0x256   : > { %v1756_v22 = vpop.f32.mrf.mxu0 }
 0x258   : > { %v1758_v23 = vpop.f32.mrf.mxu0 }
 0x25a   : > { %v1760_v24 = vpop.f32.mrf.mxu0 }
 0x25c   : > { %v1762_v25 = vpop.f32.mrf.mxu0 }
 0x25e   : > { %v1764_v26 = vpop.f32.mrf.mxu0 }
 0x260   : > { %v1766_v27 = vpop.f32.mrf.mxu0 }
 0x262   : > { %v1768_v28 = vpop.f32.mrf.mxu0 }
 0x264   : > { %v1770_v29 = vpop.f32.mrf.mxu0 }
 0x265   : > { %v780_v5 = vmax.f32 %v1770_v29, 0.0  ;;  %v775_v29 = vmax.f32 %v1760_v24, 0.0 }
 0x266   : > { %v1772_v30 = vpop.f32.mrf.mxu0 }
 0x267   : > { %v781_v39 = vmax.f32 %v1772_v30, 0.0 }
 0x268   : > { %v1777_v33 = vpop.f32.mrf.mxu0 }
 0x269   : > { %v782_v34 = vmax.f32 %v1777_v33, 0.0  ;;  %v777_v33 = vmax.f32 %v1764_v26, 0.0 }
 0x26a   : > { %v1785_v36 = vpop.f32.mrf.mxu0 }
 0x26b   : > { %v783_v16 = vmax.f32 %v1785_v36, 0.0 }
 0x26c   : > { %v1788_v38 = vpop.f32.mrf.mxu0 }
 0x26d   : > { %v784_v14 = vmax.f32 %v1788_v38, 0.0  ;;  %v779_v38 = vmax.f32 %v1768_v28, 0.0 }
 0x26e   : > { %v627_v40 = vpop.f32.mrf.mxu0 }
 0x26f   : > { %v785_v13 = vmax.f32 %v627_v40, 0.0 }
 0x270   : > { %v631_v41 = vpop.f32.mrf.mxu0 }
 0x271   : > { %v786_v11 = vmax.f32 %v631_v41, 0.0  ;;  %v778_v41 = vmax.f32 %v1766_v27, 0.0  ;;  %v773_v27 = vmax.f32 %v1756_v22, 0.0 }
 0x272   : > { %v633_v42 = vpop.f32.mrf.mxu0 }
 0x273   : > { %v787_v10 = vmax.f32 %v633_v42, 0.0  ;;  %v776_v42 = vmax.f32 %v1762_v25, 0.0  ;;  %v771_v25 = vmax.f32 %v1752_v20, 0.0 }
 0x274   : > { %v637_v43 = vpop.f32.mrf.mxu0 }
 0x275   : > { %v788_v8 = vmax.f32 %v637_v43, 0.0  ;;  %v774_v43 = vmax.f32 %v1758_v23, 0.0  ;;  %v769_v23 = vmax.f32 %v1748_v18, 0.0 }
 0x276   : > { %v639_v44 = vpop.f32.mrf.mxu0 }
 0x277   : > { %v789_v7 = vmax.f32 %v639_v44, 0.0  ;;  %v772_v44 = vmax.f32 %v1754_v21, 0.0 }
 0x278   : > { %v643_v45 = vpop.f32.mrf.mxu0 }
 0x279   : > { %v790_v4 = vmax.f32 %v643_v45, 0.0  ;;  %v770_v45 = vmax.f32 %v1750_v19, 0.0 }
 0x27a   : > { %v645_v46 = vpop.f32.mrf.mxu0 }
 0x27b   : > { %v791_v3 = vmax.f32 %v645_v46, 0.0  ;;  %v768_v46 = vmax.f32 %v1746_v17, 0.0 }
 0x27c   : > { %v649_v47 = vpop.f32.mrf.mxu0 }
 0x27d   : > { %v792_v1 = vmax.f32 %v649_v47, 0.0 }
 0x27e   : > { %v651_v48 = vpop.f32.mrf.mxu0 }
 0x27f   : > { %v793_v0 = vmax.f32 %v651_v48, 0.0 }
 0x280   : > { %v655_v49 = vpop.f32.mrf.mxu0 }
 0x281   : > { %v794_v62 = vmax.f32 %v655_v49, 0.0 }
 0x282   : > { %v657_v50 = vpop.f32.mrf.mxu0 }
 0x283   : > { %v795_v61 = vmax.f32 %v657_v50, 0.0 }
 0x284   : > { %v661_v51 = vpop.f32.mrf.mxu0 }
 0x285   : > { %v796_v59 = vmax.f32 %v661_v51, 0.0 }
 0x286   : > { %v663_v52 = vpop.f32.mrf.mxu0 }
 0x287   : > { %v797_v58 = vmax.f32 %v663_v52, 0.0 }
 0x288   : > { %v667_v53 = vpop.f32.mrf.mxu0 }
 0x289   : > { %v798_v56 = vmax.f32 %v667_v53, 0.0 }
 0x28a   : > { %v669_v54 = vpop.f32.mrf.mxu0 }
 0x28b   : > { %v799_v55 = vmax.f32 %v669_v54, 0.0 }
 0x28c   : > { %v1790_v57 = vpop.f32.mrf.mxu0 }
 0x28d   : > { %854 = vmatprep.subr.mxu1 %v799_v55 }
 0x28e   : > { %v1792_v60 = vpop.f32.mrf.mxu0  ;;  %855 = vmatpush1.msra.mxu1 %v798_v56 }
 0x28f   : > { %856 = vmatprep.subr.mxu1 %v797_v58 }
 0x290   : > { %v1794_v63 = vpop.f32.mrf.mxu0  ;;  %857 = vmatpush1.msra.mxu1 %v796_v59 }
 0x291   : > { %858 = vmatprep.subr.mxu1 %v795_v61 }
 0x292   : > { %v1796_v2 = vpop.f32.mrf.mxu0  ;;  %859 = vmatpush1.msra.mxu1 %v794_v62 }
 0x293   : > { %860 = vmatprep.subr.mxu1 %v793_v0 }
 0x294   : > { %v1798_v6 = vpop.f32.mrf.mxu0  ;;  %861 = vmatpush1.msra.mxu1 %v792_v1 }
 0x295   : > { %862 = vmatprep.subr.mxu1 %v791_v3 }
 0x296   : > { %v1800_v9 = vpop.f32.mrf.mxu0  ;;  %863 = vmatpush1.msra.mxu1 %v790_v4 }
 0x297   : > { %864 = vmatprep.subr.mxu1 %v789_v7 }
 0x298   : > { %v1802_v12 = vpop.f32.mrf.mxu0  ;;  %865 = vmatpush1.msra.mxu1 %v788_v8 }
 0x299   : > { %866 = vmatprep.subr.mxu1 %v787_v10 }
 0x29a   : > { %v1805_v15 = vpop.f32.mrf.mxu0  ;;  %867 = vmatpush1.msra.mxu1 %v786_v11 }
 0x29b   : > { %868 = vmatprep.subr.mxu1 %v785_v13 }
 0x29c   : > { %v1809_v37 = vpop.f32.mrf.mxu0  ;;  %869 = vmatpush1.msra.mxu1 %v784_v14 }
 0x29d   : > { %870 = vmatprep.subr.mxu1 %v783_v16 }
 0x29e   : > { %v1813_v40 = vpop.f32.mrf.mxu0  ;;  %871 = vmatpush1.msra.mxu1 %v782_v34 }
 0x29f   : > { %872 = vmatprep.subr.mxu1 %v781_v39 }
 0x2a0   : > { %v1817_v36 = vpop.f32.mrf.mxu0  ;;  %873 = vmatpush1.msra.mxu1 %v780_v5 }
 0x2a1   : > { %874 = vmatprep.subr.mxu1 %v779_v38 }
 0x2a2   : > { %v1821_v30 = vpop.f32.mrf.mxu0  ;;  %875 = vmatpush1.msra.mxu1 %v778_v41 }
 0x2a3   : > { %876 = vmatprep.subr.mxu1 %v777_v33 }
 0x2a4   : > { %v1825_v28 = vpop.f32.mrf.mxu0  ;;  %877 = vmatpush1.msra.mxu1 %v776_v42  ;;  %v811_v42 = vmax.f32 %v1821_v30, 0.0  ;;  %v841_v30 = vsub.s32 0, %v1775_v31  ;;  %v837_v31 = vpop.permute.xlu0 %836 }
 0x2a5   : > { %878 = vmatprep.subr.mxu1 %v775_v29  ;;  %v812_v33 = vmax.f32 %v1825_v28, 0.0  ;;  %v810_v29 = vmax.f32 %v1817_v36, 0.0  ;;  %v805_v28 = vmax.f32 %v1800_v9, 0.0  ;;  %v804_v36 = vmax.f32 %v1798_v6, 0.0 }
 0x2a6   : > { %v1829_v26 = vpop.f32.mrf.mxu0  ;;  %879 = vmatpush1.msra.mxu1 %v774_v43  ;;  %v809_v43 = vmax.f32 %v1813_v40, 0.0  ;;  %v803_v40 = vmax.f32 %v1796_v2, 0.0  ;;  %v842_v6 = vrot.slane %v837_v31, %v841_v30 }
 0x2a7   : > { %880 = vmatprep.subr.mxu1 %v773_v27  ;;  %v813_v41 = vmax.f32 %v1829_v26, 0.0  ;;  %v808_v27 = vmax.f32 %v1809_v37, 0.0  ;;  %v806_v26 = vmax.f32 %v1802_v12, 0.0  ;;  %v802_v37 = vmax.f32 %v1794_v63, 0.0  ;;  %v969_v63 = vld [vmem:[%s1929_s4 + $0x18] sm:$0xff] }
 0x2a8   : > { %v715_v24 = vpop.f32.mrf.mxu0  ;;  %881 = vmatpush1.msra.mxu1 %v772_v44  ;;  %v807_v44 = vmax.f32 %v1805_v15, 0.0  ;;  %v801_v15 = vmax.f32 %v1792_v60, 0.0  ;;  %v847_v12 = vrot.slane %v1783_v35, %v841_v30  ;;  %v968_v35 = vld [vmem:[%s1929_s4 + $0x10] sm:$0xff]  ;;  %v967_v60 = vld [vmem:[%s1929_s4 + $0x8] sm:$0xff] }
 0x2a9   : > { %882 = vmatprep.subr.mxu1 %v771_v25  ;;  %v814_v38 = vmax.f32 %v715_v24, 0.0  ;;  %v800_v25 = vmax.f32 %v1790_v57, 0.0 }
 0x2aa   : > { %v717_v47 = vpop.f32.mrf.mxu0  ;;  %883 = vmatpush1.msra.mxu1 %v770_v45 }
 0x2ab   : > { %884 = vmatprep.subr.mxu1 %v769_v23  ;;  %v815_v5 = vmax.f32 %v717_v47, 0.0 }
 0x2ac   : > { %v721_v22 = vpop.f32.mrf.mxu0  ;;  %885 = vmatpush1.msra.mxu1 %v768_v46  ;;  %v966_v46 = vld [vmem:[%s1929_s4] sm:$0xff] }
 0x2ad   : > { %v816_v39 = vmax.f32 %v721_v22, 0.0 }
 0x2ae   : > { %v723_v21 = vpop.f32.mrf.mxu0 }
 0x2af   : > { %v817_v34 = vmax.f32 %v723_v21, 0.0 }
 0x2b0   : > { %v727_v48 = vpop.f32.mrf.mxu0 }
 0x2b1   : > { %v818_v16 = vmax.f32 %v727_v48, 0.0 }
 0x2b2   : > { %v729_v49 = vpop.f32.mrf.mxu0 }
 0x2b3   : > { %v819_v14 = vmax.f32 %v729_v49, 0.0 }
 0x2b4   : > { %v733_v50 = vpop.f32.mrf.mxu0 }
 0x2b5   : > { %v820_v13 = vmax.f32 %v733_v50, 0.0 }
 0x2b6   : > { %v735_v20 = vpop.f32.mrf.mxu0 }
 0x2b7   : > { %v821_v11 = vmax.f32 %v735_v20, 0.0 }
 0x2b8   : > { %v739_v51 = vpop.f32.mrf.mxu0 }
 0x2b9   : > { %v822_v10 = vmax.f32 %v739_v51, 0.0 }
 0x2ba   : > { %v741_v52 = vpop.f32.mrf.mxu0 }
 0x2bb   : > { %v823_v8 = vmax.f32 %v741_v52, 0.0 }
 0x2bc   : > { %v745_v19 = vpop.f32.mrf.mxu0 }
 0x2bd   : > { %v824_v7 = vmax.f32 %v745_v19, 0.0 }
 0x2be   : > { %v747_v53 = vpop.f32.mrf.mxu0 }
 0x2bf   : > { %v825_v4 = vmax.f32 %v747_v53, 0.0 }
 0x2c0   : > { %v751_v54 = vpop.f32.mrf.mxu0 }
 0x2c1   : > { %v826_v3 = vmax.f32 %v751_v54, 0.0 }
 0x2c2   : > { %v753_v55 = vpop.f32.mrf.mxu0 }
 0x2c3   : > { %v827_v1 = vmax.f32 %v753_v55, 0.0 }
 0x2c4   : > { %v757_v18 = vpop.f32.mrf.mxu0 }
 0x2c5   : > { %v828_v0 = vmax.f32 %v757_v18, 0.0 }
 0x2c6   : > { %v759_v56 = vpop.f32.mrf.mxu0 }
 0x2c7   : > { %v829_v62 = vmax.f32 %v759_v56, 0.0 }
 0x2c8   : > { %v763_v58 = vpop.f32.mrf.mxu0 }
 0x2c9   : > { %v830_v61 = vmax.f32 %v763_v58, 0.0 }
 0x2ca   : > { %v765_v17 = vpop.f32.mrf.mxu0 }
 0x2cb   : > { %v831_v59 = vmax.f32 %v765_v17, 0.0 }
 0x2cd   : > { %886 = vmatprep.subr.mxu1 %v831_v59 }
 0x2ce   : > { %887 = vmatpush2.msra.mxu1 %v830_v61 }
 0x2cf   : > { %888 = vmatprep.subr.mxu1 %v829_v62 }
 0x2d0   : > { %889 = vmatpush2.msra.mxu1 %v828_v0 }
 0x2d1   : > { %890 = vmatprep.subr.mxu1 %v827_v1 }
 0x2d2   : > { %891 = vmatpush2.msra.mxu1 %v826_v3 }
 0x2d3   : > { %892 = vmatprep.subr.mxu1 %v825_v4 }
 0x2d4   : > { %893 = vmatpush2.msra.mxu1 %v824_v7 }
 0x2d5   : > { %894 = vmatprep.subr.mxu1 %v823_v8 }
 0x2d6   : > { %895 = vmatpush2.msra.mxu1 %v822_v10 }
 0x2d7   : > { %896 = vmatprep.subr.mxu1 %v821_v11 }
 0x2d8   : > { %897 = vmatpush2.msra.mxu1 %v820_v13 }
 0x2d9   : > { %898 = vmatprep.subr.mxu1 %v819_v14 }
 0x2da   : > { %899 = vmatpush2.msra.mxu1 %v818_v16 }
 0x2db   : > { %900 = vmatprep.subr.mxu1 %v817_v34 }
 0x2dc   : > { %901 = vmatpush2.msra.mxu1 %v816_v39 }
 0x2dd   : > { %902 = vmatprep.subr.mxu1 %v815_v5 }
 0x2de   : > { %903 = vmatpush2.msra.mxu1 %v814_v38 }
 0x2df   : > { %904 = vmatprep.subr.mxu1 %v813_v41 }
 0x2e0   : > { %905 = vmatpush2.msra.mxu1 %v812_v33 }
 0x2e1   : > { %906 = vmatprep.subr.mxu1 %v811_v42 }
 0x2e2   : > { %907 = vmatpush2.msra.mxu1 %v810_v29 }
 0x2e3   : > { %908 = vmatprep.subr.mxu1 %v809_v43 }
 0x2e4   : > { %909 = vmatpush2.msra.mxu1 %v808_v27 }
 0x2e5   : > { %910 = vmatprep.subr.mxu1 %v807_v44 }
 0x2e6   : > { %911 = vmatpush2.msra.mxu1 %v806_v26 }
 0x2e7   : > { %912 = vmatprep.subr.mxu1 %v805_v28 }
 0x2e8   : > { %913 = vmatpush2.msra.mxu1 %v804_v36 }
 0x2e9   : > { %914 = vmatprep.subr.mxu1 %v803_v40 }
 0x2ea   : > { %915 = vmatpush2.msra.mxu1 %v802_v37 }
 0x2eb   : > { %916 = vmatprep.subr.mxu1 %v801_v15 }
 0x2ec   : > { %917 = vmatpush2.msra.mxu1 %v800_v25 }
 0x2ed   : > { %919 = vmatmul.mubr.f32.vlgmr.msra.gmra.mxu1 %v847_v12  ;;  %1360 = vmatprep.subr.mxu1 %v1487_v32 }
 0x2ee   : > { %1361 = vmatpush3.msra.mxu1 %v969_v63  ;;  %1368 = vmatprep.mubr.msk.f32.mxu1 %vm1491_vm7, %v1487_v32 }
 0x2ef   : > { %1362 = vmatprep.subr.mxu1 %v1487_v32 }
 0x2f0   : > { %1363 = vmatpush3.msra.mxu1 %v968_v35 }
 0x2f1   : > { %1364 = vmatprep.subr.mxu1 %v1487_v32 }
 0x2f2   : > { %1365 = vmatpush3.msra.mxu1 %v967_v60 }
 0x2f3   : > { %1366 = vmatprep.subr.mxu1 %v1487_v32 }
 0x2f4   : > { %1367 = vmatpush3.msra.mxu1 %v966_v46 }
 0x3ad   : > { %v920_v57 = vpop.f32.mrf.mxu1 }
 0x3ae   : > { %v921_v2 = vadd.f32 %v920_v57, %v842_v6 }
 0x3af   : > { %v922_v9 = vpop.f32.mrf.mxu1 }
 0x3b0   : > { %v923_v45 = vadd.f32 %v922_v9, %v842_v6  ;;  %v934_v24 = vrot.slane %v921_v2, 5  ;;  %v926_v23 = vrot.slane %v921_v2, 7  ;;  %v930_v22 = vrot.slane %v921_v2, 6 }
 0x3b2   : > { %935 = vrot.lane.b32.xlu0 %v934_v24, %s1489_s19  ;;  %927 = vrot.lane.b32.xlu1 %v926_v23, %s1485_s16  ;;  %v945_v47 = vrot.slane %v923_v45, 2  ;;  %v941_v21 = vrot.slane %v923_v45, 3  ;;  %v949_v48 = vrot.slane %v923_v45, 1  ;;  %v939_v52 = vrot.slane %v923_v45, 4 }
 0x3b6   : > { %946 = vrot.lane.b32.xlu0 %v945_v47, %s1488_s18  ;;  %931 = vrot.lane.b32.xlu1 %v930_v22, %s1488_s18 }
 0x3ba   : > { %942 = vrot.lane.b32.xlu1 %v941_v21, %s1485_s16  ;;  %s1340_s16 = sshll.u32 %s1467_s23, 3 }
 0x3bb   : > { %s1044_s18 = scalar_lea.vmem [#allocation2], %s1340_s16 }
 0x3be   : > { %950 = vrot.lane.b32.xlu1 %v949_v48, %s1489_s19 }
 0x424   : > { %v928_v49 = vpop.permute.xlu1 %927  ;;  %v936_v32 = vpop.permute.xlu0 %935 }
 0x425   : > { %v954_v50 = vsel %vm953_vm8, %v921_v2, %v928_v49 }
 0x428   : > { %v932_v20 = vpop.permute.xlu1 %931  ;;  %v947_v18 = vpop.permute.xlu0 %946 }
 0x429   : > { %v956_v51 = vsel %vm955_vm9, %v954_v50, %v932_v20 }
 0x42a   : > { %v957_v19 = vsel %vm504_vm5, %v956_v51, %v936_v32 }
 0x42b   : > { %v959_v53 = vsel %vm958_vm10, %v957_v19, %v939_v52 }
 0x42c   : > { %v943_v54 = vpop.permute.xlu1 %942 }
 0x42d   : > { %v961_v55 = vsel %vm960_vm11, %v959_v53, %v943_v54 }
 0x42e   : > { %v963_v56 = vsel %vm962_vm12, %v961_v55, %v947_v18 }
 0x430   : > { %v951_v58 = vpop.permute.xlu1 %950 }
 0x431   : > { %v965_v17 = vsel %vm964_vm13, %v963_v56, %v951_v58 }
 0x432   : > { %1369 = vmatmul.mubr.msk.f32.vlgmr.msra.gmra.mxu1 %vm366_vm2, %v965_v17 }
 0x4f0   : > { %1050 = sbr.rel (%p1341_p7) target bundleno = 1828 (0x724), region = 48 }
 0x4f2   : > { %v1039_v59 = vpop.f32.mrf.mxu1 }
 0x4f3   : > { %1046 = vst.msk [vmem:[%s1044_s18] sm:$0xff] %vm1045_vm14, %v1039_v59 }
 0x4f4   : > { %v1370_v61 = vpop.f32.mrf.mxu1 }
 0x4f5   : > { %v1051_v1 = vld [vmem:[%s1930_s5] sm:$0xff]  ;;  %vm1057_vm15 = vcmask 130048   ;;  %v1053_v3 = vld [vmem:[%s1930_s5 + $0x10] sm:$0xff]  ;;  %v1052_v4 = vld [vmem:[%s1930_s5 + $0x8] sm:$0xff]  ;;  %vm1164_vm0 = vcmask 251904  }
 0x4f6   : > { %v1054_v7 = vld [vmem:[%s1930_s5 + $0x18] sm:$0x7f]  ;;  %1375 = vmatprep.mubr.msk.f32.mxu0 %vm1057_vm15, %v1051_v1  ;;  %1378 = vmatprep.mubr.msk.f32.mxu1 %vm1057_vm15, %v1053_v3 }
 0x4fa   : > { %v1056_v62 = vld [vmem:[#allocation2 + $0x8] sm:$0xff]  ;;  %v1055_v0 = vld [vmem:[#allocation2] sm:$0xff] }
 0x4fb   : > { %1371 = vmatprep.subr.mxu0 %v1056_v62  ;;  %1381 = vmatprep.subr.mxu1 %v1056_v62 }
 0x4fc   : > { %1372 = vmatpush3.msra.mxu0 %v1056_v62  ;;  %1383 = vmatpush3.msra.mxu1 %v1056_v62 }
 0x4fd   : > { %1373 = vmatprep.subr.mxu0 %v1055_v0  ;;  %1382 = vmatprep.subr.mxu1 %v1055_v0 }
 0x4fe   : > { %1374 = vmatpush3.msra.mxu0 %v1055_v0  ;;  %1384 = vmatpush3.msra.mxu1 %v1055_v0 }
 0x4ff   : > { %1376 = vmatmul.mubr.msk.f32.vlgmr.msra.gmra.mxu0 %vm1057_vm15, %v1052_v4  ;;  %1379 = vmatmul.mubr.msk.f32.vlgmr.msra.gmra.mxu1 %vm1057_vm15, %v1054_v7 }
 0x5bf   : > { %v1377_v8 = vpop.f32.mrf.mxu0  ;;  %v1380_v10 = vpop.f32.mrf.mxu1 }
 0x5c0   : > { %v1165_v11 = vsel %vm1164_vm0, %v1380_v10, -inf  ;;  %v1158_v13 = vsel %vm1045_vm14, %v1377_v8, -inf }
 0x5c1   : > { %1166 = vmax.xlane.f32.xlu0 %v1165_v11  ;;  %v1146_v14 = vpop.f32.mrf.mxu1  ;;  %1159 = vmax.xlane.f32.xlu1 %v1158_v13  ;;  %v1136_v16 = vpop.f32.mrf.mxu0 }
 0x5c2   : > { %v1161_v34 = vsel %vm1045_vm14, %v1146_v14, -inf  ;;  %v1155_v39 = vsel %vm1045_vm14, %v1136_v16, -inf }
 0x5c5   : > { %1162 = vmax.xlane.f32.xlu1 %v1161_v34  ;;  %1156 = vmax.xlane.f32.xlu0 %v1155_v39 }
 0x64a   : > { %v1167_v5 = vpop.xlane.xlu0 %1166  ;;  %v1160_v38 = vpop.xlane.xlu1 %1159 }
 0x64b   : > { %v1168_v41 = vsel %vm964_vm13, %v1167_v5, -inf }
 0x64e   : > { %v1163_v33 = vpop.xlane.xlu1 %1162  ;;  %v1157_v42 = vpop.xlane.xlu0 %1156 }
 0x64f   : > { %v1170_v29 = vmax.f32 %v1163_v33, %v1168_v41  ;;  %v1169_v43 = vmax.f32 %v1157_v42, %v1160_v38 }
 0x651   : > { %v1171_v27 = vmax.f32 %v1169_v43, %v1170_v29 }
 0x653   : > { %v1172_v44 = vrot.slane %v1171_v27, 4 }
 0x655   : > { %v1173_v26 = vmax.f32 %v1171_v27, %v1172_v44 }
 0x657   : > { %v1174_v28 = vrot.slane %v1173_v26, 2 }
 0x659   : > { %v1175_v30 = vmax.f32 %v1173_v26, %v1174_v28 }
 0x65b   : > { %v1176_v36 = vrot.slane %v1175_v30, 1 }
 0x65d   : > { %v1177_v40 = vmax.f32 %v1175_v30, %v1176_v36 }
 0x65f   : > { %v1179_v37 = vsub.f32 %v1377_v8, %v1177_v40  ;;  %v1178_v15 = vsub.f32 %v1136_v16, %v1177_v40  ;;  %v1181_v12 = vsub.f32 %v1380_v10, %v1177_v40  ;;  %v1180_v25 = vsub.f32 %v1146_v14, %v1177_v40 }
 0x661   : > { %v1184_v31 = vmul.f32 1.442695, %v1179_v37  ;;  %v1182_v6 = vmul.f32 1.442695, %v1178_v15  ;;  %v1188_v63 = vmul.f32 1.442695, %v1181_v12 }
 0x662   : > { %v1186_v35 = vmul.f32 1.442695, %v1180_v25 }
 0x663   : > { %1435 = vpow2.f32 %v1184_v31 }
 0x664   : > { %1437 = vpow2.f32 %v1182_v6 }
 0x665   : > { %1439 = vpow2.f32 %v1188_v63 }
 0x666   : > { %1441 = vpow2.f32 %v1186_v35 }
 0x670   : > { %v1436_v57 = vpop.eup %1435 }
 0x671   : > { %v1438_v60 = vpop.eup %1437  ;;  %v1193_v2 = vsel %vm1045_vm14, %v1436_v57, 0.0 }
 0x672   : > { %v1440_v9 = vpop.eup %1439  ;;  %1194 = vadd.xlane.f32.xlu1 %v1193_v2  ;;  %v1190_v45 = vsel %vm1045_vm14, %v1438_v60, 0.0 }
 0x673   : > { %v1442_v24 = vpop.eup %1441  ;;  %1191 = vadd.xlane.f32.xlu0 %v1190_v45  ;;  %v1199_v23 = vsel %vm1164_vm0, %v1440_v9, 0.0 }
 0x674   : > { %v1196_v46 = vsel %vm1045_vm14, %v1442_v24, 0.0 }
 0x676   : > { %1200 = vadd.xlane.f32.xlu1 %v1199_v23 }
 0x677   : > { %1197 = vadd.xlane.f32.xlu0 %v1196_v46 }
 0x6fb   : > { %v1195_v47 = vpop.xlane.xlu1 %1194 }
 0x6fc   : > { %v1192_v22 = vpop.xlane.xlu0 %1191 }
 0x6fd   : > { %v1202_v21 = vadd.f32 %v1195_v47, %v1192_v22 }
 0x6ff   : > { %v1201_v48 = vpop.xlane.xlu1 %1200 }
 0x700   : > { %v1204_v49 = vsel %vm964_vm13, %v1201_v48, 0.0  ;;  %v1198_v50 = vpop.xlane.xlu0 %1197 }
 0x701   : > { %v1203_v20 = vadd.f32 %v1202_v21, %v1198_v50 }
 0x703   : > { %v1205_v32 = vadd.f32 %v1204_v49, %v1203_v20 }
 0x705   : > { %v1206_v51 = vrot.slane %v1205_v32, 4 }
 0x707   : > { %v1207_v52 = vadd.f32 %v1206_v51, %v1205_v32 }
 0x709   : > { %v1208_v19 = vrot.slane %v1207_v52, 2 }
 0x70b   : > { %v1209_v53 = vadd.f32 %v1208_v19, %v1207_v52 }
 0x70d   : > { %v1210_v54 = vrot.slane %v1209_v53, 1 }
 0x70f   : > { %v1211_v55 = vadd.f32 %v1210_v54, %v1209_v53 }
 0x711   : > { %1443 = vrcp.f32 %v1211_v55 }
 0x71e   : > { %v1444_v18 = vpop.eup %1443 }
 0x71f   : > { %v1213_v56 = vmul.f32 %v1444_v18, %v1438_v60  ;;  %v1214_v58 = vmul.f32 %v1444_v18, %v1436_v57  ;;  %v1215_v17 = vmul.f32 %v1444_v18, %v1442_v24  ;;  %v1216_v59 = vmul.f32 %v1444_v18, %v1440_v9 }
 0x721   : > { %1217 = vst.msk [vmem:[%s1566_s11] sm:$0xff] %vm1045_vm14, %v1213_v56  ;;  %1218 = vst.msk [vmem:[%s1566_s11 + $0x8] sm:$0xff] %vm1045_vm14, %v1214_v58 }
 0x722   : > { %1219 = vst.msk [vmem:[%s1566_s11 + $0x10] sm:$0xff] %vm1045_vm14, %v1215_v17 }
 0x723   : > { %1220 = vst.msk [vmem:[%s1566_s11 + $0x18] sm:$0x7f] %vm1164_vm0, %v1216_v59 }
 0x724 PF: > { %s18_s27 = sadd.s32 1, %s1483_s27   ;;  %s1932_s23 = smov %s1475_s25 }
 0x725   : > { %p15_p8 = scmp.ge.s32.totalorder %s18_s27, 6   ;;  %s1933_s24 = smov %s1479_s26 }
 0x726   : > { %s1934_s25 = smov %s1937_s3  ;;  %s1935_s26 = smov %s1941_s28 }
 0x727   :  { %17 = sbr.rel (!%p15_p8) target bundleno = 3 (0x3), region = 79 }

</bundles_post_ra>
